<compile_context>
chip_gen: v7x
topology: tpu7x:2x2x1
jax: 0.10.0
libtpu: 0.0.40
codegen_flags: <defaults>
</compile_context>

<pallas_src>
import functools

import jax
import jax.numpy as jnp
from jax import lax
from jax.experimental import pallas as pl
from jax.experimental.pallas import tpu as pltpu


_NEG_INF = float("-inf")


def _round_up(v, m):
    return -(-v // m) * m


# ---------------------------------------------------------------------------
# Kernels
# ---------------------------------------------------------------------------

def _window_max_grouped(x, col, *, kernel_size, left_pad, group_len, fill):
    """Stride-1 window max over length-`group_len` groups packed along lanes.

    x: (bm, G*group_len).  Lane q holds element t = col[q] of group q//group_len.
    result[q] = max_k padded_group[t + k] where padded_group has `left_pad`
    leading -inf positions; out-of-group lanes are masked to `fill`.
    Shifts are uniform wide-lane rolls (XLU), seams fixed by masks (VPU).
    """
    wide = x.shape[-1]
    acc = None
    for k in range(kernel_size):
        d = k - left_pad                                # lane offset of element k
        if d == 0:
            v = x
        else:
            v = pltpu.roll(x, shift=(-d) % wide, axis=1)   # v[q] = x[q + d]
            valid = jnp.logical_and(col + d >= 0, col + d <= group_len - 1)
            v = jnp.where(valid, v, fill)
        acc = v if acc is None else jnp.maximum(acc, v)
    return acc


def _grouped_kernel(col_ref, x_ref, o_ref, *, kernel_size, left_pad, group_len,
                    fill):
    # stride == 1 and out_len == group_len: the running max IS the output.
    o_ref[...] = _window_max_grouped(
        x_ref[...], col_ref[...], kernel_size=kernel_size, left_pad=left_pad,
        group_len=group_len, fill=fill)


def _grouped_sel_kernel(col_ref, sel_ref, x_ref, o_ref, *, kernel_size, left_pad,
                        group_len, fill):
    # General grouped path: stride-1 running max, then one hoisted 0/1 selection
    # matmul (VMEM-resident `sel`, built once in the wrapper) re-pitches /
    # decimates every group in a single lane-dense store.
    r = _window_max_grouped(
        x_ref[...], col_ref[...], kernel_size=kernel_size, left_pad=left_pad,
        group_len=group_len, fill=fill)
    o_ref[...] = jnp.dot(r, sel_ref[...],
                         preferred_element_type=jnp.float32).astype(o_ref.dtype)


def _rows_stride1_kernel(x_ref, o_ref, *, kernel_size, padding, zero_pad, length,
                         out_len, fill):
    """Per-row pooling, stride 1 (zero_pad fallback).  No staging copy: interior
    output columns are K shifted slices of x, the few boundary columns
    (padding / zero-pad seams) are fixed individually."""
    x = x_ref[...]
    bm = x.shape[0]
    dt = x.dtype
    left = padding + (1 if zero_pad else 0)
    lo = left
    hi = length + left - kernel_size
    if hi >= lo:
        width = hi - lo + 1
        acc = x[:, 0:width]
        for k in range(1, kernel_size):
            acc = jnp.maximum(acc, x[:, k:k + width])
        o_ref[:, lo:hi + 1] = acc
    for j in [j for j in range(out_len) if j < lo or j > hi]:
        parts = []
        has_zero = False
        for k in range(kernel_size):
            u = j + k                                   # position in padded row
            if zero_pad and u == padding:
                has_zero = True
            elif left <= u < left + length:
                parts.append(x[:, u - left:u - left + 1])
        if parts:
            colv = parts[0]
            for p in parts[1:]:
                colv = jnp.maximum(colv, p)
            if has_zero:
                colv = jnp.maximum(colv, jnp.zeros((), dt))
        elif has_zero:
            colv = jnp.zeros((bm, 1), dt)
        else:
            colv = jnp.full((bm, 1), fill, dt)
        o_ref[:, j:j + 1] = colv


def _rows_strided_kernel(sel_ref, x_ref, o_ref, pad_ref, *, kernel_size, stride,
                         padding, zero_pad, length, out_len, fill):
    """Per-row pooling for stride > 1 (only reached for zero_pad configs):
    padded scratch row + stride-1 running max + hoisted 0/1 selection matmul."""
    bm = x_ref.shape[0]
    dt = pad_ref.dtype
    left = padding + (1 if zero_pad else 0)
    if padding > 0:
        pad_ref[:, 0:padding] = jnp.full((bm, padding), fill, dt)
        pad_ref[:, left + length:left + length + padding] = (
            jnp.full((bm, padding), fill, dt))
    if zero_pad:
        pad_ref[:, padding:padding + 1] = jnp.zeros((bm, 1), dt)
    pad_ref[:, left:left + length] = x_ref[...]
    m_len = (out_len - 1) * stride + 1
    acc = pad_ref[:, 0:m_len]
    for k in range(1, kernel_size):
        acc = jnp.maximum(acc, pad_ref[:, k:k + m_len])
    o_ref[...] = jnp.dot(acc, sel_ref[...],
                         preferred_element_type=jnp.float32).astype(o_ref.dtype)


# ---------------------------------------------------------------------------
# Wrapper: tiling / grouping heuristics
# ---------------------------------------------------------------------------

def _pick_group(rows, length, out_len, max_wide=1024):
    """Largest useful G dividing `rows`: prefer G*out_len dense (>=128, ideally a
    multiple of 128) with the smallest wide width."""
    best, best_key = 1, None
    gmax = min(rows, max(1, max_wide // max(length, 1)))
    for g in range(1, gmax + 1):
        if rows % g:
            continue
        wide_out = g * out_len
        key = (min(wide_out, 128),
               1 if wide_out % 128 == 0 else 0,
               -(g * length))
        if best_key is None or key > best_key:
            best, best_key = g, key
    return best


def _vmem_budget():
    # Safe defaults for 64-MiB-VMEM chips (v7x-class); grow on 128-MiB chips.
    budget, limit = 14 * 1024 * 1024, 32 * 1024 * 1024
    try:
        cap = int(pltpu.get_tpu_info().vmem_capacity_bytes)
        if cap >= 100 * 1024 * 1024:          # v5e / v6e: 128 MiB per core
            budget, limit = 28 * 1024 * 1024, 64 * 1024 * 1024
    except Exception:
        pass
    return budget, limit


def _pick_block_rows(rows, db_widths, single_widths, itemsize, budget):
    def lane_pad(w):
        return _round_up(max(int(w), 1), 128)
    per_row = itemsize * (2 * sum(lane_pad(w) for w in db_widths)
                          + sum(lane_pad(w) for w in single_widths))
    align = max(8, 32 // max(itemsize, 1))    # sublane multiple for the dtype
    bm = max(align, (budget // max(per_row, 1)) // align * align)
    # Keep >= ~4 grid steps so both v7x TensorCores get work and the pipeline
    # actually double-buffers (no-op cost on single-core v5e/v6e).
    if rows >= 4 * align:
        bm = min(bm, _round_up(-(-rows // 4), align))
    if bm >= rows:
        bm = rows
    return bm


def maxpool1d_rows(x2, *, kernel_size, stride, padding, zero_pad):
    """Sliding max over the last axis of (rows, L): optionally one leading zero
    (zero_pad), then MaxPool1d(kernel_size, stride, padding) with -inf padding."""
    rows, length = x2.shape
    if not jnp.issubdtype(x2.dtype, jnp.floating):
        raise NotImplementedError("maxpool1d_rows supports floating dtypes only")
    zp = 1 if zero_pad else 0
    left = padding + zp
    l_pad = length + left + padding
    out_len = (l_pad - kernel_size) // stride + 1
    if out_len <= 0:
        raise ValueError("pooling window does not fit the (padded) input")
    m_len = (out_len - 1) * stride + 1
    dtype = x2.dtype
    itemsize = jnp.dtype(dtype).itemsize
    budget, vmem_limit = _vmem_budget()
    cparams = pltpu.CompilerParams(dimension_semantics=("parallel",),
                                   vmem_limit_bytes=vmem_limit)

    if (not zero_pad) and m_len <= length:
        # ---- Lane-dense grouped path (covers stride 1 and stride > 1) ----
        g = _pick_group(rows, length, out_len)
        rows_g = rows // g
        wide_in, wide_out = g * length, g * out_len
        xg = x2.reshape(rows_g, wide_in)                       # free reshape
        col = (jnp.arange(wide_in, dtype=jnp.int32) % length).reshape(1, wide_in)
        bm = _pick_block_rows(rows_g, (wide_in, wide_out), (), itemsize, budget)
        grid = (pl.cdiv(rows_g, bm),)
        col_spec = pl.BlockSpec((1, wide_in), lambda i: (0, 0))
        x_spec = pl.BlockSpec((bm, wide_in), lambda i: (i, 0))
        o_spec = pl.BlockSpec((bm, wide_out), lambda i: (i, 0))
        out_shape = jax.ShapeDtypeStruct((rows_g, wide_out), dtype)

        if stride == 1 and out_len == length:
            kern = functools.partial(
                _grouped_kernel, kernel_size=kernel_size, left_pad=left,
                group_len=length, fill=_NEG_INF)
            out = pl.pallas_call(
                kern, out_shape=out_shape, grid=grid,
                in_specs=[col_spec, x_spec], out_specs=o_spec,
                compiler_params=cparams)(col, xg)
        else:
            # Hoisted 0/1 selection matrix: picks lane g*L + j*stride for output
            # lane g*out_len + j.  Built once, VMEM resident, input dtype.
            q = jnp.arange(wide_out, dtype=jnp.int32)
            src = (q // out_len) * length + (q % out_len) * stride
            sel = (jnp.arange(wide_in, dtype=jnp.int32)[:, None]
                   == src[None, :]).astype(dtype)
            sel_spec = pl.BlockSpec((wide_in, wide_out), lambda i: (0, 0))
            kern = functools.partial(
                _grouped_sel_kernel, kernel_size=kernel_size, left_pad=left,
                group_len=length, fill=_NEG_INF)
            out = pl.pallas_call(
                kern, out_shape=out_shape, grid=grid,
                in_specs=[col_spec, sel_spec, x_spec], out_specs=o_spec,
                compiler_params=cparams)(col, sel, xg)
        return out.reshape(rows, out_len)

    if stride == 1:
        # ---- zero_pad stride-1 fallback: per-row, no staging copy ----
        bm = _pick_block_rows(rows, (length, out_len), (), itemsize, budget)
        grid = (pl.cdiv(rows, bm),)
        kern = functools.partial(
            _rows_stride1_kernel, kernel_size=kernel_size, padding=padding,
            zero_pad=zero_pad, length=length, out_len=out_len, fill=_NEG_INF)
        return pl.pallas_call(
            kern, out_shape=jax.ShapeDtypeStruct((rows, out_len), dtype),
            grid=grid,
            in_specs=[pl.BlockSpec((bm, length), lambda i: (i, 0))],
            out_specs=pl.BlockSpec((bm, out_len), lambda i: (i, 0)),
            compiler_params=cparams)(x2)

    # ---- zero_pad stride>1 fallback: padded scratch + hoisted selection ----
    bm = _pick_block_rows(rows, (length, out_len), (l_pad,), itemsize, budget)
    grid = (pl.cdiv(rows, bm),)
    src = jnp.arange(out_len, dtype=jnp.int32) * stride
    sel = (jnp.arange(m_len, dtype=jnp.int32)[:, None] == src[None, :]).astype(dtype)
    kern = functools.partial(
        _rows_strided_kernel, kernel_size=kernel_size, stride=stride,
        padding=padding, zero_pad=zero_pad, length=length, out_len=out_len,
        fill=_NEG_INF)
    return pl.pallas_call(
        kern, out_shape=jax.ShapeDtypeStruct((rows, out_len), dtype),
        grid=grid,
        in_specs=[pl.BlockSpec((m_len, out_len), lambda i: (0, 0)),
                  pl.BlockSpec((bm, length), lambda i: (i, 0))],
        out_specs=pl.BlockSpec((bm, out_len), lambda i: (i, 0)),
        scratch_shapes=[pltpu.VMEM((bm, l_pad), dtype)],
        compiler_params=cparams)(sel, x2)


def maxpool_forward(x, kernel_size, stride=1, padding=1, zero_pad=False):
    """Pallas equivalent of pnasnet.MaxPool.forward for an (N, C, L) input.

    The ZeroPad2d((1, 0, 1, 0)) channel pad of the original module is dead code
    (its pooled channel is dropped by `x[:, 1:, :]`), so only the leading zero
    on the pooled axis L is applied -- fused into the kernel.
    """
    n, c, l = x.shape
    out2 = maxpool1d_rows(x.reshape(n * c, l), kernel_size=kernel_size,
                          stride=stride, padding=padding, zero_pad=zero_pad)
    return out2.reshape(n, c, out2.shape[-1])


def _reference(x, kernel_size, stride=1, padding=1, zero_pad=False):
    # Pure-JAX reference mirroring the PyTorch semantics exactly.
    if zero_pad:
        x = jnp.pad(x, ((0, 0), (1, 0), (1, 0)))
    out = lax.reduce_window(
        x, -jnp.inf, lax.max,
        window_dimensions=(1, 1, kernel_size),
        window_strides=(1, 1, stride),
        padding=((0, 0), (0, 0), (padding, padding)))
    if zero_pad:
        out = out[:, 1:, :]
    return out


if __name__ == "__main__":
    key = jax.random.PRNGKey(0)
    k_small, k_big = jax.random.split(key)

    # MaxPool1d input layout: (batch, channels, length).
    x_small = jax.random.normal(k_small, (2, 4, 16), dtype=jnp.float32)
    # Larger case so the grouped lane-dense path gets a multi-step grid.
    x_big = jax.random.normal(k_big, (4, 64, 32), dtype=jnp.float32)

    configs = [
        dict(kernel_size=3, stride=1, padding=1, zero_pad=False),
        dict(kernel_size=3, stride=1, padding=1, zero_pad=True),
        dict(kernel_size=3, stride=2, padding=1, zero_pad=False),
        dict(kernel_size=3, stride=2, padding=1, zero_pad=True),
    ]
    for x in (x_small, x_big):
        for cfg in configs:
            out = jax.block_until_ready(maxpool_forward(x, **cfg))
            expect = _reference(x, **cfg)
            assert out.shape == expect.shape, (out.shape, expect.shape, cfg)
            assert bool(jnp.allclose(out, expect, atol=1e-6, rtol=1e-6)), (
                cfg, x.shape)

    print("KERNEL_OK")
</pallas_src>

<mosaic_0001>
module attributes {stable_mosaic.version = 11 : i64} {
  func.func @_grouped_kernel(%arg0: i32, %arg1: memref<1x128xi32, #tpu.memory_space<vmem>>, %arg2: memref<1x128xf32, #tpu.memory_space<vmem>>, %arg3: memref<1x128xf32, #tpu.memory_space<vmem>>) attributes {dimension_semantics = [#tpu.dimension_semantics<parallel>], iteration_bounds = array<i64: 1>, scalar_prefetch = 0 : i64, scratch_operands = 0 : i64, tpu.core_type = #tpu.core_type<tc>, window_params = [{pipeline_mode = #tpu.pipeline_mode<synchronous>, transform_indices = @transform_0, window_bounds = array<i64: 1, 128>}, {transform_indices = @transform_1, window_bounds = array<i64: 1, 128>}, {transform_indices = @transform_2, window_bounds = array<i64: 1, 128>}]} {
    %c0 = arith.constant 0 : index
    %c0_0 = arith.constant 0 : index
    %0 = vector.load %arg2[%c0, %c0_0] : memref<1x128xf32, #tpu.memory_space<vmem>>, vector<1x128xf32>
    %c0_1 = arith.constant 0 : index
    %c0_2 = arith.constant 0 : index
    %1 = vector.load %arg1[%c0_1, %c0_2] : memref<1x128xi32, #tpu.memory_space<vmem>>, vector<1x128xi32>
    %c1_i32 = arith.constant 1 : i32
    %2 = tpu.dynamic_rotate %0 by %c1_i32 dim 1 : vector<1x128xf32>, i32 -> vector<1x128xf32>
    %c-1_i32 = arith.constant -1 : i32
    %3 = vector.broadcast %c-1_i32 : i32 to vector<1x128xi32>
    %4 = arith.addi %1, %3 : vector<1x128xi32>
    %c0_i32 = arith.constant 0 : i32
    %5 = vector.broadcast %c0_i32 : i32 to vector<1x128xi32>
    %6 = arith.cmpi sge, %4, %5 : vector<1x128xi32>
    %c-1_i32_3 = arith.constant -1 : i32
    %7 = vector.broadcast %c-1_i32_3 : i32 to vector<1x128xi32>
    %8 = arith.addi %1, %7 : vector<1x128xi32>
    %c15_i32 = arith.constant 15 : i32
    %9 = vector.broadcast %c15_i32 : i32 to vector<1x128xi32>
    %10 = arith.cmpi sle, %8, %9 : vector<1x128xi32>
    %11 = arith.andi %6, %10 : vector<1x128xi1>
    %cst = arith.constant 0xFF800000 : f32
    %12 = vector.broadcast %cst : f32 to vector<1x128xf32>
    %13 = arith.select %11, %2, %12 : vector<1x128xi1>, vector<1x128xf32>
    %14 = arith.maximumf %13, %0 : vector<1x128xf32>
    %c127_i32 = arith.constant 127 : i32
    %15 = tpu.dynamic_rotate %0 by %c127_i32 dim 1 : vector<1x128xf32>, i32 -> vector<1x128xf32>
    %c1_i32_4 = arith.constant 1 : i32
    %16 = vector.broadcast %c1_i32_4 : i32 to vector<1x128xi32>
    %17 = arith.addi %1, %16 : vector<1x128xi32>
    %c0_i32_5 = arith.constant 0 : i32
    %18 = vector.broadcast %c0_i32_5 : i32 to vector<1x128xi32>
    %19 = arith.cmpi sge, %17, %18 : vector<1x128xi32>
    %c1_i32_6 = arith.constant 1 : i32
    %20 = vector.broadcast %c1_i32_6 : i32 to vector<1x128xi32>
    %21 = arith.addi %1, %20 : vector<1x128xi32>
    %c15_i32_7 = arith.constant 15 : i32
    %22 = vector.broadcast %c15_i32_7 : i32 to vector<1x128xi32>
    %23 = arith.cmpi sle, %21, %22 : vector<1x128xi32>
    %24 = arith.andi %19, %23 : vector<1x128xi1>
    %cst_8 = arith.constant 0xFF800000 : f32
    %25 = vector.broadcast %cst_8 : f32 to vector<1x128xf32>
    %26 = arith.select %24, %15, %25 : vector<1x128xi1>, vector<1x128xf32>
    %27 = arith.maximumf %14, %26 : vector<1x128xf32>
    %c0_9 = arith.constant 0 : index
    %c0_10 = arith.constant 0 : index
    %28 = vector.load %arg3[%c0_9, %c0_10] : memref<1x128xf32, #tpu.memory_space<vmem>>, vector<1x128xf32>
    tpu.vector_store %arg3[%c0_9, %c0_10], %27 {strides = array<i32>} : memref<1x128xf32, #tpu.memory_space<vmem>>, vector<1x128xf32>,
    return
  }
  func.func @transform_0(%arg0: i32) -> (i32, i32) {
    %c0_i32 = arith.constant 0 : i32
    %c0_i32_0 = arith.constant 0 : i32
    %c0_i32_1 = arith.constant 0 : i32
    return %c0_i32, %c0_i32_0 : i32, i32
  }
  func.func @transform_1(%arg0: i32) -> (i32, i32) {
    %c0_i32 = arith.constant 0 : i32
    %c0_i32_0 = arith.constant 0 : i32
    return %arg0, %c0_i32 : i32, i32
  }
  func.func @transform_2(%arg0: i32) -> (i32, i32) {
    %c0_i32 = arith.constant 0 : i32
    %c0_i32_0 = arith.constant 0 : i32
    return %arg0, %c0_i32 : i32, i32
  }
}

</mosaic_0001>

<bundles_post_ra>
// kernel: tpu_custom_call.1
= control target key start
LH: loop header
LB: loop body
LE: loop exit
PB: predicated region body
PF: predicated region fallthrough
CT: control target
= control target key end

     0   :  { %7 = vsyncpa [#allocation3], 0  ;;  %s156_s0 = inlined_call_operand.hbm [shape: s32[1,128], index: 0, kind: input, shape index: {}]   ;;  %s157_s1 = inlined_call_operand.vmem [shape: f32[1,128], index: 1, kind: input, shape index: {}]   ;;  %s158_s2 = inlined_call_operand.hbm [shape: f32[1,128], index: 2, kind: output, shape index: {}]  }
   0x1   :  { %8 = vsyncpa [#allocation4], 0  ;;  %s110_s9 = smov [#allocation2]   ;;  %s62_s13 = scalar_lea.hbm %s156_s0, 16 }
   0x2   :  { %s15_s10 = sshll.u32 %s110_s9, 4  ;;  %p63_p0 = scmp.ne.s32.totalorder %s156_s0, %s62_s13  ;;  %s16_s10 = int_to_ptr.vmem [resolvable:$true] %s15_s10 }
   0x3   :  { %p66_p1 = scmp.lt.u32.totalorder %s62_s13, %s156_s0 }
   0x5   :  { %p68_p2 = pnand %p66_p1, %p63_p0 }
   0x7   :  { %71 = shalt.err (!%p68_p2)
}
   0x8   :  { %s72_s18 = scalar_lea.vmem %s16_s10, 16  ;;  %s76_s19 = scalar_lea.vmem %s16_s10, 32 }
   0x9   :  { %p73_p3 = scmp.ne.s32.totalorder %s16_s10, %s72_s18  ;;  %p77_p4 = scmp.lt.s32.totalorder %s16_s10, %s16_s10 }
   0xa   :  { %p78_p5 = scmp.lt.s32.totalorder %s76_s19, %s72_s18 }
   0xc   :  { %p79_p6 = por %p78_p5, %p77_p4 }
   0xe   :  { %p80_p7 = pnand %p79_p6, %p73_p3 }
  0x10   :  { %83 = shalt.err (!%p80_p7)
}
  0x11   :  { %18 = dma.hbm_to_vmem [thread:$0]  %s156_s0, 16, %s16_s10, [#allocation3]  }
  0x12   :  { %106 = dma.done.wait [#allocation3], 16  }
  0x13   :  { %107 = vsyncadd [#allocation3], 4294967280  ;;  %v24_v0 = vld [vmem:[%s157_s1] sm:$0x1]  ;;  %s111_s24 = smov 1   ;;  %s112_s25 = smov 127  }
  0x14   :  { %26 = vrot.lane.b32.xlu0 %v24_v0, %s111_s24  ;;  %v25_v1 = vld [vmem:[#allocation2] sm:$0x1]  ;;  %s113_s0 = smov [#allocation5]  }
  0x15   :  { %v28_v2 = vadd.s32 4294967295, %v25_v1  ;;  %v36_v3 = vadd.s32 1, %v25_v1  ;;  %s49_s26 = sshll.u32 %s113_s0, 4  ;;  %s50_s26 = int_to_ptr.vmem [resolvable:$true] %s49_s26 }
  0x16   :  { %s84_s1 = scalar_lea.vmem %s50_s26, 16  ;;  %s88_s27 = scalar_lea.vmem %s50_s26, 32 }
  0x17   :  { %vm29_vm0 = vcmp.ge.s32.totalorder %v28_v2, 0  ;;  %vm30_vm1 = vcmp.le.s32.totalorder %v28_v2, 15  ;;  %vm37_vm3 = vcmp.ge.s32.totalorder %v36_v3, 0  ;;  %vm38_vm4 = vcmp.le.s32.totalorder %v36_v3, 15  ;;  %p85_p8 = scmp.ne.s32.totalorder %s50_s26, %s84_s1  ;;  %p89_p9 = scmp.lt.s32.totalorder %s50_s26, %s50_s26 }
  0x18   :  { %34 = vrot.lane.b32.xlu0 %v24_v0, %s112_s25  ;;  %vm31_vm2 = vmand %vm29_vm0, %vm30_vm1  ;;  %p90_p10 = scmp.lt.s32.totalorder %s88_s27, %s84_s1 }
  0x19   :  { %vm39_vm5 = vmand %vm37_vm3, %vm38_vm4 }
  0x1a   :  { %p91_p11 = por %p90_p10, %p89_p9 }
  0x1c   :  { %p92_p12 = pnand %p91_p11, %p85_p8 }
  0x86   :  { %v27_v4 = vpop.permute.xlu0 %26 }
  0x87   :  { %v32_v5 = vsel %vm31_vm2, %v27_v4, -inf }
  0x88   :  { %v33_v6 = vmax.f32 %v32_v5, %v24_v0 }
  0x8a   :  { %v35_v7 = vpop.permute.xlu0 %34 }
  0x8b   :  { %v40_v8 = vsel %vm39_vm5, %v35_v7, -inf }
  0x8c   :  { %v41_v9 = vmax.f32 %v33_v6, %v40_v8 }
  0x8e   :  { %42 = vst [vmem:[#allocation5] sm:$0x1] %v41_v9 }
  0x8f   :  { %95 = shalt.err (!%p92_p12)
}
  0x90   :  { %s96_s30 = scalar_lea.hbm %s158_s2, 16 }
  0x91   :  { %p97_p13 = scmp.ne.s32.totalorder %s158_s2, %s96_s30  ;;  %p100_p0 = scmp.lt.u32.totalorder %s96_s30, %s158_s2 }
  0x93   :  { %p102_p1 = pnand %p100_p0, %p97_p13 }
  0x95   :  { %105 = shalt.err (!%p102_p1)
}
  0x96   :  { %52 = dma.vmem_to_hbm [thread:$0]  %s50_s26, 16, %s158_s2, [#allocation4]  }
  0x97   :  { %108 = dma.done.wait [#allocation4], 16  }
  0x98   :  { %109 = vsyncadd [#allocation4], 4294967280 }
  0x99   :  { %56 = vsyncpa [#allocation3], 1 }
  0x9a   :  { %57 = vsyncpa [#allocation4], 1 }

</bundles_post_ra>
